<compile_context>
chip_gen: v6e
topology: v6e:2x2x1
jax: 0.10.0
libtpu: 0.0.40
codegen_flags: <defaults>
</compile_context>

<pallas_src>
import jax
import jax.numpy as jnp
import numpy as np
from jax.experimental import pallas as pl
from jax.experimental.pallas import tpu as pltpu

K = 4                          # every ConvTranspose2d in Generator uses kernel_size=4
BN_EPS = 1e-5                  # PyTorch BatchNorm2d default
LANE = 128                     # lane width: pad Cout up to this for dense stores
MATMUL_DTYPE = jnp.bfloat16    # MXU inputs; accumulation + epilogue stay f32
TILE_N_TARGET = 512            # measured sweet spot for pipelined tiles
VMEM_LIMIT = 32 * 1024 * 1024  # safe on v5e/v6e/v7x; tiles here are << this


def _round_up(x, m):
    return ((x + m - 1) // m) * m


def _pick_tile(n):
    # Large N: pipeline in 512-row tiles. Small N: single tile (don't over-tile the
    # tiny early layers; they are launch-overhead dominated anyway).
    return TILE_N_TARGET if n >= TILE_N_TARGET else _round_up(n, 8)


# --------------------------------------------------------------------------- #
# Pallas kernels                                                               #
# --------------------------------------------------------------------------- #
def _conv_stats_kernel(p_ref, w_ref, y_ref, s_ref):
    """Pass 1 of a BN layer: one MXU matmul per (parity, N-tile) grid step.
       p_ref: (1, tile_n, Kd) bf16 patches   w_ref: (1, Kd, Cpad) bf16 weights
       y_ref: (1, tile_n, Cpad) f32 raw conv output
       s_ref: (8, Cpad) f32 resident accumulator; row 0 = sum, row 1 = sum of squares."""
    @pl.when(jnp.logical_and(pl.program_id(0) == 0, pl.program_id(1) == 0))
    def _init():
        s_ref[...] = jnp.zeros_like(s_ref)

    acc = jnp.dot(p_ref[0], w_ref[0], preferred_element_type=jnp.float32)
    y_ref[0] = acc
    s_ref[0:1, :] = s_ref[0:1, :] + jnp.sum(acc, axis=0, keepdims=True)
    s_ref[1:2, :] = s_ref[1:2, :] + jnp.sum(acc * acc, axis=0, keepdims=True)


def _conv_tanh_kernel(p_ref, w_ref, y_ref):
    """Final layer: MXU matmul + fused Tanh (f32 epilogue)."""
    acc = jnp.dot(p_ref[0], w_ref[0], preferred_element_type=jnp.float32)
    y_ref[0] = jnp.tanh(acc)


def _scale_relu_kernel(y_ref, sc_ref, sh_ref, o_ref):
    """Pass 2 of a BN layer: y * scale + shift, then ReLU (all f32)."""
    o_ref[0] = jnp.maximum(y_ref[0] * sc_ref[...] + sh_ref[...], 0.0)


# --------------------------------------------------------------------------- #
# pallas_call wrappers (tiled grids, pipelined BlockSpecs)                     #
# --------------------------------------------------------------------------- #
def _conv_stats_call(patches, weights, tile_n):
    p_cnt, n_pad, kd = patches.shape
    cpad = weights.shape[2]
    grid = (p_cnt, n_pad // tile_n)
    return pl.pallas_call(
        _conv_stats_kernel,
        out_shape=(jax.ShapeDtypeStruct((p_cnt, n_pad, cpad), jnp.float32),
                   jax.ShapeDtypeStruct((8, cpad), jnp.float32)),
        grid_spec=pltpu.PrefetchScalarGridSpec(
            num_scalar_prefetch=0,
            grid=grid,
            in_specs=[pl.BlockSpec((1, tile_n, kd), lambda p, t: (p, t, 0)),
                      pl.BlockSpec((1, kd, cpad), lambda p, t: (p, 0, 0))],
            out_specs=(pl.BlockSpec((1, tile_n, cpad), lambda p, t: (p, t, 0)),
                       pl.BlockSpec((8, cpad), lambda p, t: (0, 0)))),
        compiler_params=pltpu.CompilerParams(
            dimension_semantics=("arbitrary", "arbitrary"),   # both feed the stats acc
            vmem_limit_bytes=VMEM_LIMIT),
    )(patches, weights)


def _conv_tanh_call(patches, weights, tile_n):
    p_cnt, n_pad, kd = patches.shape
    cpad = weights.shape[2]
    grid = (p_cnt, n_pad // tile_n)
    return pl.pallas_call(
        _conv_tanh_kernel,
        out_shape=jax.ShapeDtypeStruct((p_cnt, n_pad, cpad), jnp.float32),
        grid_spec=pltpu.PrefetchScalarGridSpec(
            num_scalar_prefetch=0,
            grid=grid,
            in_specs=[pl.BlockSpec((1, tile_n, kd), lambda p, t: (p, t, 0)),
                      pl.BlockSpec((1, kd, cpad), lambda p, t: (p, 0, 0))],
            out_specs=pl.BlockSpec((1, tile_n, cpad), lambda p, t: (p, t, 0))),
        compiler_params=pltpu.CompilerParams(
            dimension_semantics=("parallel", "parallel"),
            vmem_limit_bytes=VMEM_LIMIT),
    )(patches, weights)


def _scale_relu_call(y, scale, shift, tile_n):
    p_cnt, n_pad, cpad = y.shape
    grid = (p_cnt, n_pad // tile_n)
    return pl.pallas_call(
        _scale_relu_kernel,
        out_shape=jax.ShapeDtypeStruct((p_cnt, n_pad, cpad), jnp.float32),
        grid_spec=pltpu.PrefetchScalarGridSpec(
            num_scalar_prefetch=0,
            grid=grid,
            in_specs=[pl.BlockSpec((1, tile_n, cpad), lambda p, t: (p, t, 0)),
                      pl.BlockSpec((1, cpad), lambda p, t: (0, 0)),
                      pl.BlockSpec((1, cpad), lambda p, t: (0, 0))],
            out_specs=pl.BlockSpec((1, tile_n, cpad), lambda p, t: (p, t, 0))),
        compiler_params=pltpu.CompilerParams(
            dimension_semantics=("parallel", "parallel"),
            vmem_limit_bytes=VMEM_LIMIT),
    )(y, scale, shift)


# --------------------------------------------------------------------------- #
# JAX glue: parity decomposition of ConvTranspose2d, weight layout, BN folding #
# --------------------------------------------------------------------------- #
def _first_layer_patches(z2d):
    """ConvT(z, F0, 4, 1, 0) on a 1x1 input: out[b,kh,kw,:] = z[b] @ w[:,:,kh,kw]."""
    b, zdim = z2d.shape
    return jnp.broadcast_to(z2d[None], (K * K, b, zdim))          # (16, B, Z)


def _first_layer_weights(w_pt, cpad):
    zdim, cout = w_pt.shape[0], w_pt.shape[1]
    wm = jnp.transpose(w_pt, (2, 3, 0, 1)).reshape(K * K, zdim, cout)  # p = kh*4+kw
    return jnp.pad(wm, ((0, 0), (0, 0), (0, cpad - cout)))


# For stride-2/pad-1/k-4 ConvTranspose: output parity r uses kernel taps
# _KTAPS[r] = (tap for input offset a=0, tap for input offset a=1).
_KTAPS = {0: (1, 3), 1: (2, 0)}


def _stride2_parity_patches(x):
    """x: (B, H, W, Cin) NHWC -> (4, B*H*W, 4*Cin) per-parity 2x2-tap patches."""
    b, h, w, c = x.shape
    xp = jnp.pad(x, ((0, 0), (1, 1), (1, 1), (0, 0)))

    def row_slices(r):   # input rows for offsets a=0, a=1 (ih = i / i-1 or i / i+1)
        return (xp[:, 1:h + 1], xp[:, 0:h]) if r == 0 else (xp[:, 1:h + 1], xp[:, 2:h + 2])

    def col_slices(xr, r):
        return (xr[:, :, 1:w + 1], xr[:, :, 0:w]) if r == 0 else (xr[:, :, 1:w + 1], xr[:, :, 2:w + 2])

    parities = []
    for rh in range(2):
        rows = row_slices(rh)
        for rw in range(2):
            taps = []
            for a in range(2):
                taps.extend(col_slices(rows[a], rw))          # order (a, c)
            pt = jnp.stack(taps, axis=3)                      # (B, H, W, 4, Cin)
            parities.append(pt.reshape(b * h * w, 4 * c))
    return jnp.stack(parities, axis=0)                        # (4, B*H*W, 4*Cin)


def _stride2_parity_weights(w_pt, cpad):
    """PyTorch ConvTranspose2d weight (Cin, Cout, 4, 4) -> (4, 4*Cin, Cpad)."""
    cin, cout = w_pt.shape[0], w_pt.shape[1]
    mats = []
    for rh in range(2):
        for rw in range(2):
            taps = [w_pt[:, :, _KTAPS[rh][a], _KTAPS[rw][c]]
                    for a in range(2) for c in range(2)]      # each (Cin, Cout)
            mats.append(jnp.stack(taps, axis=0).reshape(4 * cin, cout))
    wm = jnp.stack(mats, axis=0)                              # (4, 4*Cin, Cout)
    return jnp.pad(wm, ((0, 0), (0, 0), (0, cpad - cout)))


def _bn_scale_shift(stats, gamma, beta, cout, cpad, count):
    """Fold batch statistics into per-channel scale/shift (single-pass sums)."""
    mean = stats[0, :] / count
    var = jnp.maximum(stats[1, :] / count - mean * mean, 0.0)
    g = jnp.pad(gamma.reshape(-1), (0, cpad - cout))          # padded channels -> 0
    b = jnp.pad(beta.reshape(-1), (0, cpad - cout))
    scale = g * jax.lax.rsqrt(var + BN_EPS)
    shift = b - mean * scale
    return scale.reshape(1, cpad), shift.reshape(1, cpad)


def _run_fused_layer(patches, weights, layer, n_true, p_cnt):
    tile_n = _pick_tile(n_true)
    n_pad = _round_up(n_true, tile_n)
    if n_pad != n_true:
        patches = jnp.pad(patches, ((0, 0), (0, n_pad - n_true), (0, 0)))
    pm = patches.astype(MATMUL_DTYPE)
    wm = weights.astype(MATMUL_DTYPE)
    cout, cpad = layer["cout"], weights.shape[2]
    if layer["act"] == "bn_relu":
        y, stats = _conv_stats_call(pm, wm, tile_n)
        scale, shift = _bn_scale_shift(stats, layer["gamma"], layer["beta"],
                                       cout, cpad, float(p_cnt * n_true))
        y = _scale_relu_call(y, scale, shift, tile_n)
    else:  # "tanh"
        y = _conv_tanh_call(pm, wm, tile_n)
    return y[:, :n_true, :cout]


# --------------------------------------------------------------------------- #
# Generator: deterministic parameter init + forward                            #
# --------------------------------------------------------------------------- #
def init_generator_params(key, z_dim, image_channels, num_init_filters, num_hidden):
    specs = [dict(cin=z_dim, cout=num_init_filters, stride=1, pad=0, act="bn_relu")]
    filt = num_init_filters
    for _ in range(num_hidden):
        specs.append(dict(cin=filt, cout=filt // 2, stride=2, pad=1, act="bn_relu"))
        filt //= 2
    specs.append(dict(cin=filt, cout=image_channels, stride=2, pad=1, act="tanh"))

    params = []
    for s in specs:
        key, wk = jax.random.split(key)
        w = 0.05 * jax.random.normal(wk, (s["cin"], s["cout"], K, K), jnp.float32)
        gamma = jnp.ones((1, s["cout"]), jnp.float32)
        beta = jnp.zeros((1, s["cout"]), jnp.float32)
        params.append(dict(w=w, gamma=gamma, beta=beta, **s))
    return params


def generator_forward(params, z_dim, inp):
    if inp.ndim > 2:
        # Mirrors PyTorch forward: image-shaped input is replaced by uniform noise.
        # TODO(synk): torch.rand resampling happens host-side here, not in-kernel.
        inp = jax.random.uniform(jax.random.PRNGKey(42), (inp.shape[0], z_dim), jnp.float32)
    b = inp.shape[0]

    # Layer 0: ConvT(z, F0, 4, 1, 0): 1x1 -> 4x4, 16 single-tap parities.
    layer0 = params[0]
    cout0 = layer0["cout"]
    cpad0 = _round_up(cout0, LANE)
    y = _run_fused_layer(_first_layer_patches(inp),
                         _first_layer_weights(layer0["w"], cpad0),
                         layer0, n_true=b, p_cnt=K * K)
    x = jnp.transpose(y, (1, 0, 2)).reshape(b, K, K, cout0)       # NHWC

    # Stride-2 layers: 4 output parities with 2x2 effective kernels (no zero FLOPs).
    for layer in params[1:]:
        bsz, h, w, _ = x.shape
        cout = layer["cout"]
        cpad = _round_up(cout, LANE)
        y = _run_fused_layer(_stride2_parity_patches(x),
                             _stride2_parity_weights(layer["w"], cpad),
                             layer, n_true=bsz * h * w, p_cnt=4)
        x = (y.reshape(2, 2, bsz, h, w, cout)
              .transpose(2, 3, 0, 4, 1, 5)
              .reshape(bsz, 2 * h, 2 * w, cout))
    return jnp.transpose(x, (0, 3, 1, 2))                         # NCHW, matches PyTorch


# Pure-JAX reference (XLA conv) used only to validate the Pallas implementation.
# It quantizes the matmul inputs to bf16 the same way the kernels do (f32 accumulation).
def generator_forward_ref(params, z_dim, inp):
    if inp.ndim > 2:
        inp = jax.random.uniform(jax.random.PRNGKey(42), (inp.shape[0], z_dim), jnp.float32)
    b = inp.shape[0]
    x = inp.reshape(b, 1, 1, z_dim)
    for layer in params:
        wf = jnp.transpose(jnp.flip(layer["w"], axis=(2, 3)), (2, 3, 0, 1))  # HWIO
        p = K - 1 - layer["pad"]
        y = jax.lax.conv_general_dilated(
            x.astype(MATMUL_DTYPE), wf.astype(MATMUL_DTYPE),
            window_strides=(1, 1), padding=[(p, p), (p, p)],
            lhs_dilation=(layer["stride"], layer["stride"]), rhs_dilation=(1, 1),
            dimension_numbers=("NHWC", "HWIO", "NHWC"),
            preferred_element_type=jnp.float32)
        if layer["act"] == "bn_relu":
            mean = y.mean(axis=(0, 1, 2))
            var = jnp.maximum((y * y).mean(axis=(0, 1, 2)) - mean * mean, 0.0)
            scale = layer["gamma"].reshape(-1) * jax.lax.rsqrt(var + BN_EPS)
            shift = layer["beta"].reshape(-1) - mean * scale
            y = jnp.maximum(y * scale + shift, 0.0)
        else:
            y = jnp.tanh(y)
        x = y
    return jnp.transpose(x, (0, 3, 1, 2))


if __name__ == "__main__":
    z_dim, image_channels, num_init_filters, num_hidden = 16, 3, 32, 2
    batch = 2

    key = jax.random.PRNGKey(0)
    pkey, zkey = jax.random.split(key)
    params = init_generator_params(pkey, z_dim, image_channels, num_init_filters, num_hidden)
    z = jax.random.normal(zkey, (batch, z_dim), jnp.float32)

    out = jax.block_until_ready(generator_forward(params, z_dim, z))
    # 1x1 -> 4 -> 8 -> 16 -> 32 spatial; output is NCHW like PyTorch.
    assert out.shape == (batch, image_channels, 32, 32), out.shape

    ref = jax.block_until_ready(generator_forward_ref(params, z_dim, z))
    np.testing.assert_allclose(np.asarray(out), np.asarray(ref), rtol=2e-2, atol=2e-3)

    print("KERNEL_OK")
</pallas_src>

<mosaic_0001>
module attributes {stable_mosaic.version = 11 : i64} {
  func.func @_conv_stats_kernel(%arg0: i32, %arg1: i32, %arg2: memref<1x8x16xbf16, #tpu.memory_space<vmem>>, %arg3: memref<1x16x128xbf16, #tpu.memory_space<vmem>>, %arg4: memref<1x8x128xf32, #tpu.memory_space<vmem>>, %arg5: memref<8x128xf32, #tpu.memory_space<vmem>>) attributes {dimension_semantics = [#tpu.dimension_semantics<arbitrary>, #tpu.dimension_semantics<arbitrary>], iteration_bounds = array<i64: 16, 1>, scalar_prefetch = 0 : i64, scratch_operands = 0 : i64, tpu.core_type = #tpu.core_type<tc>, window_params = [{transform_indices = @transform_0, window_bounds = array<i64: 1, 8, 16>}, {transform_indices = @transform_1, window_bounds = array<i64: 1, 16, 128>}, {transform_indices = @transform_2, window_bounds = array<i64: 1, 8, 128>}, {pipeline_mode = #tpu.pipeline_mode<synchronous>, transform_indices = @transform_3, window_bounds = array<i64: 8, 128>}]} {
    %c0_i32 = arith.constant 0 : i32
    %0 = arith.cmpi eq, %arg0, %c0_i32 : i32
    %c0_i32_0 = arith.constant 0 : i32
    %1 = arith.cmpi eq, %arg1, %c0_i32_0 : i32
    %2 = arith.andi %0, %1 : i1
    %3 = arith.extui %2 : i1 to i32
    %c0_i32_1 = arith.constant 0 : i32
    %4 = arith.cmpi ne, %3, %c0_i32_1 : i32
    scf.if %4 {
      %cst_19 = arith.constant 0.000000e+00 : f32
      %24 = vector.broadcast %cst_19 : f32 to vector<8x128xf32>
      %c0_20 = arith.constant 0 : index
      %c0_21 = arith.constant 0 : index
      %25 = vector.load %arg5[%c0_20, %c0_21] : memref<8x128xf32, #tpu.memory_space<vmem>>, vector<8x128xf32>
      tpu.vector_store %arg5[%c0_20, %c0_21], %24 {strides = array<i32>} : memref<8x128xf32, #tpu.memory_space<vmem>>, vector<8x128xf32>,
    } else {
    }
    %c0 = arith.constant 0 : index
    %c0_2 = arith.constant 0 : index
    %c0_3 = arith.constant 0 : index
    %5 = vector.load %arg2[%c0, %c0_2, %c0_3] : memref<1x8x16xbf16, #tpu.memory_space<vmem>>, vector<1x8x16xbf16>
    %6 = vector.shape_cast %5 : vector<1x8x16xbf16> to vector<8x16xbf16>
    %c0_4 = arith.constant 0 : index
    %c0_5 = arith.constant 0 : index
    %c0_6 = arith.constant 0 : index
    %7 = vector.load %arg3[%c0_4, %c0_5, %c0_6] : memref<1x16x128xbf16, #tpu.memory_space<vmem>>, vector<1x16x128xbf16>
    %8 = vector.shape_cast %7 : vector<1x16x128xbf16> to vector<16x128xbf16>
    %cst = arith.constant dense<0.000000e+00> : vector<8x128xf32>
    %9 = tpu.matmul %6, %8, %cst {dimension_numbers = #tpu.dot_dimension_numbers<[1], [0], [0], [1], [0, 0, 1, 1], [], []>} : vector<8x16xbf16>, vector<16x128xbf16>, vector<8x128xf32> -> vector<8x128xf32>
    %c0_7 = arith.constant 0 : index
    %c0_8 = arith.constant 0 : index
    %c0_9 = arith.constant 0 : index
    %10 = vector.load %arg4[%c0_7, %c0_8, %c0_9] : memref<1x8x128xf32, #tpu.memory_space<vmem>>, vector<1x8x128xf32>
    %11 = vector.shape_cast %10 : vector<1x8x128xf32> to vector<8x128xf32>
    %12 = vector.shape_cast %9 : vector<8x128xf32> to vector<1x8x128xf32>
    tpu.vector_store %arg4[%c0_7, %c0_8, %c0_9], %12 {strides = array<i32>} : memref<1x8x128xf32, #tpu.memory_space<vmem>>, vector<1x8x128xf32>,
    %c0_10 = arith.constant 0 : index
    %c0_11 = arith.constant 0 : index
    %13 = vector.load %arg5[%c0_10, %c0_11] : memref<8x128xf32, #tpu.memory_space<vmem>>, vector<1x128xf32>
    %cst_12 = arith.constant dense<0.000000e+00> : vector<128xf32>
    %14 = vector.multi_reduction <add>, %9, %cst_12 [0] : vector<8x128xf32> to vector<128xf32>
    %15 = vector.shape_cast %14 : vector<128xf32> to vector<1x128xf32>
    %16 = arith.addf %13, %15 : vector<1x128xf32>
    %c0_13 = arith.constant 0 : index
    %c0_14 = arith.constant 0 : index
    %17 = vector.load %arg5[%c0_13, %c0_14] : memref<8x128xf32, #tpu.memory_space<vmem>>, vector<1x128xf32>
    tpu.vector_store %arg5[%c0_13, %c0_14], %16 {strides = array<i32>} : memref<8x128xf32, #tpu.memory_space<vmem>>, vector<1x128xf32>,
    %c1 = arith.constant 1 : index
    %c0_15 = arith.constant 0 : index
    %18 = vector.load %arg5[%c1, %c0_15] : memref<8x128xf32, #tpu.memory_space<vmem>>, vector<1x128xf32>
    %19 = arith.mulf %9, %9 : vector<8x128xf32>
    %cst_16 = arith.constant dense<0.000000e+00> : vector<128xf32>
    %20 = vector.multi_reduction <add>, %19, %cst_16 [0] : vector<8x128xf32> to vector<128xf32>
    %21 = vector.shape_cast %20 : vector<128xf32> to vector<1x128xf32>
    %22 = arith.addf %18, %21 : vector<1x128xf32>
    %c1_17 = arith.constant 1 : index
    %c0_18 = arith.constant 0 : index
    %23 = vector.load %arg5[%c1_17, %c0_18] : memref<8x128xf32, #tpu.memory_space<vmem>>, vector<1x128xf32>
    tpu.vector_store %arg5[%c1_17, %c0_18], %22 {strides = array<i32>} : memref<8x128xf32, #tpu.memory_space<vmem>>, vector<1x128xf32>,
    return
  }
  func.func @transform_0(%arg0: i32, %arg1: i32) -> (i32, i32, i32) {
    %c0_i32 = arith.constant 0 : i32
    %c0_i32_0 = arith.constant 0 : i32
    return %arg0, %arg1, %c0_i32 : i32, i32, i32
  }
  func.func @transform_1(%arg0: i32, %arg1: i32) -> (i32, i32, i32) {
    %c0_i32 = arith.constant 0 : i32
    %c0_i32_0 = arith.constant 0 : i32
    %c0_i32_1 = arith.constant 0 : i32
    return %arg0, %c0_i32, %c0_i32_0 : i32, i32, i32
  }
  func.func @transform_2(%arg0: i32, %arg1: i32) -> (i32, i32, i32) {
    %c0_i32 = arith.constant 0 : i32
    %c0_i32_0 = arith.constant 0 : i32
    return %arg0, %arg1, %c0_i32 : i32, i32, i32
  }
  func.func @transform_3(%arg0: i32, %arg1: i32) -> (i32, i32) {
    %c0_i32 = arith.constant 0 : i32
    %c0_i32_0 = arith.constant 0 : i32
    %c0_i32_1 = arith.constant 0 : i32
    return %c0_i32, %c0_i32_0 : i32, i32
  }
}

</mosaic_0001>

<bundles_post_ra>
// kernel: tpu_custom_call.1
= control target key start
LH: loop header
LB: loop body
LE: loop exit
PB: predicated region body
PF: predicated region fallthrough
CT: control target
= control target key end

     0   :  { %9 = vsyncpa [#allocation3], 0  ;;  %s966_s0 = inlined_call_operand.hbm [shape: bf16[16,8,16], index: 0, kind: input, shape index: {}]   ;;  %s967_s1 = inlined_call_operand.hbm [shape: bf16[16,16,128], index: 1, kind: input, shape index: {}]   ;;  %s968_s2 = inlined_call_operand.hbm [shape: f32[16,8,128], index: 2, kind: output, shape index: {0}]   ;;  %s969_s3 = inlined_call_operand.hbm [shape: f32[8,128], index: 3, kind: output, shape index: {1}]  }
   0x1   :  { %11 = vsyncpa [#allocation3 + $0x1], 0 }
   0x2   :  { %12 = vsyncpa [#allocation6], 0 }
   0x3   :  { %14 = vsyncpa [#allocation6 + $0x1], 0 }
   0x4   :  { %15 = vsyncpa [#allocation4], 0 }
   0x5   :  { %17 = vsyncpa [#allocation4 + $0x1], 0 }
   0x6   :  { %18 = vsyncpa [#allocation9], 0  ;;  %s774_s12 = smov 0   ;;  %s776_s13 = smov 0  }
   0x7   :  { %s778_s14 = smov 0   ;;  %s780_s15 = smov 0  }
   0x8   :  { %s782_s16 = smov 0   ;;  %s784_s17 = smov 0  }
   0x9 LB: > { %s463_s18 = sadd.s32 4294967295, %s743_s17   ;;  %s464_s19 = sadd.s32 4294967294, %s743_s17   ;;  %s743_s17 = sphi %s784_s17, %s24_s17   ;;  %s739_s16 = sphi %s782_s16, %s982_s16   ;;  %s735_s15 = sphi %s780_s15, %s981_s15   ;;  %s731_s14 = sphi %s778_s14, %s980_s14   ;;  %s727_s13 = sphi %s776_s13, %s979_s13   ;;  %s723_s12 = sphi %s774_s12, %s978_s12  }
   0xa   : > { %s36_s20 = sadd.s32 1, %s739_s16  ;;  %s45_s21 = sadd.s32 1, %s731_s14 }
   0xb   : > { %p38_p0 = scmp.ge.s32.totalorder %s36_s20, 16  ;;  %p52_p1 = scmp.ne.s32.totalorder %s731_s14, %s727_s13 }
   0xc   : > { %p53_p2 = scmp.eq.s32.totalorder %s743_s17, 0  ;;  %p58_p3 = scmp.ne.s32.totalorder %s727_s13, %s723_s12 }
   0xd   : > { %s984_s20 = smov (%p38_p0, %s36_s20), 0  ;;  %p59_p5 = scmp.eq.s32.totalorder %s463_s18, 0 }
   0xe   : > { %p815_p4 = por %p53_p2, %p52_p1  ;;  %s40_s23 = ssub.s32 %s739_s16, %s984_s20 }
   0xf   : > { %p821_p6 = scmp.eq.s32.totalorder %s463_s18, 15  ;;  %p43_p7 = scmp.eq.s32.totalorder %s40_s23, 0 }
  0x10   : > { %p825_p8 = por %p59_p5, %p58_p3  ;;  %p116_p10 = scmp.eq.s32.totalorder %s464_s19, 15 }
  0x11   : > { %p831_p9 = por %p821_p6, %p52_p1  ;;  %p516_p12 = scmp.lt.s32.totalorder %s743_s17, 16 }
  0x12   : > { %s836_s27 = scalar_select %p43_p7, %s731_s14, %s45_s21  }
  0x13   : > { %p838_p11 = por %p116_p10, %p58_p3  ;;  %s844_s29 = sand.u32 1, %s731_s14  }
  0x14   : > { %s467_s30 = sshll.u32 %s844_s29, 2  ;;  %s468_s4 = sshll.u32 %s739_s16, 6 }
  0x15   : > { %s974_s28 = scalar_select %p838_p11, 1, 0 }
  0x16   : > { %s167_s7 = scalar_lea.hbm %s966_s0, %s468_s4  ;;  %s161_s8 = scalar_lea.vmem [#allocation2], %s467_s30 }
  0x17   : > { %s169_s9 = sshll.u32 %s161_s8, 4  ;;  %p853_p13 = pnand %p516_p12, %p815_p4  ;;  %s170_s9 = int_to_ptr.vmem [resolvable:$true] %s169_s9 }
  0x18   : > { %p472_p0 = scmp.ge.s32.totalorder %s743_s17, 1  ;;  %p195_p1 = scmp.lt.s32.totalorder %s743_s17, 17 }
  0x19   : > { %s158_s11 = scalar_lea.sflag [#allocation3], %s844_s29  ;;  %p577_p2 = pneg %p853_p13 }
  0x1a   : > { %s588_s18 = scalar_lea.vmem %s170_s9, 64  ;;  %s745_s19 = smov [#allocation2]  }
  0x1b   : > { %p589_p3 = scmp.ne.s32.totalorder %s170_s9, %s588_s18  ;;  %s593_s21 = sshll.u32 %s745_s19, 4  ;;  %s594_s21 = int_to_ptr.vmem [resolvable:$false] %s593_s21 }
  0x1c   : > { %s595_s22 = scalar_lea.vmem %s594_s21, 128  ;;  %p596_p4 = scmp.lt.s32.totalorder %s170_s9, %s594_s21 }
  0x1d   : > { %p591_p5 = pnand %p589_p3, %p577_p2  ;;  %p597_p10 = scmp.lt.s32.totalorder %s595_s22, %s588_s18 }
  0x1f   : > { %p592_p7 = pneg %p591_p5  ;;  %p598_p12 = por %p597_p10, %p596_p4 }
  0x21   : > { %p599_p11 = pnand %p598_p12, %p592_p7 }
  0x23   : > { %602 = shalt.err (!%p599_p11)
}
  0x24   : > { %508 = dma.hbm_to_vmem [thread:$0]  (!%p853_p13), %s167_s7, 64, %s170_s9, %s158_s11  }
  0x25   : > { %p871_p3 = pnand %p472_p0, %p195_p1  ;;  %s469_s30 = sshll.u32 %s844_s29, 3 }
  0x26   : > { %s485_s4 = sshll.u32 %s739_s16, 7  ;;  %s180_s18 = scalar_lea.vmem [#allocation5], %s469_s30 }
  0x27   : > { %s186_s8 = scalar_lea.hbm %s967_s1, %s485_s4  ;;  %s187_s19 = sshll.u32 %s180_s18, 4  ;;  %s188_s19 = int_to_ptr.vmem [resolvable:$true] %s187_s19 }
  0x28   : > { %s177_s21 = scalar_lea.sflag [#allocation6], %s844_s29  ;;  %s616_s22 = scalar_lea.vmem %s188_s19, 128 }
  0x29   : > { %p617_p11 = scmp.ne.s32.totalorder %s188_s19, %s616_s22  ;;  %s746_s7 = smov [#allocation5]  }
  0x2a   : > { %s621_s9 = sshll.u32 %s746_s7, 4  ;;  %s622_s9 = int_to_ptr.vmem [resolvable:$false] %s621_s9 }
  0x2b   : > { %p619_p5 = pnand %p617_p11, %p577_p2  ;;  %s623_s11 = scalar_lea.vmem %s622_s9, 256 }
  0x2c   : > { %p624_p0 = scmp.lt.s32.totalorder %s188_s19, %s622_s9  ;;  %p625_p1 = scmp.lt.s32.totalorder %s623_s11, %s616_s22 }
  0x2d   : > { %p620_p7 = pneg %p619_p5 }
  0x2e   : > { %p626_p4 = por %p625_p1, %p624_p0 }
  0x30   : > { %p627_p10 = pnand %p626_p4, %p620_p7 }
  0x32   : > { %630 = shalt.err (!%p627_p10)
}
  0x33   : > { %s747_s4 = smov 64   ;;  %s748_s30 = smov 4  }
  0x34   : > { %511 = dma.hbm_to_vmem [thread:$0]  (!%p853_p13), %s186_s8, 128, %s188_s19, %s177_s21, %s747_s4, %s747_s4, %s748_s30  }
  0x35   : > { %199 = sbr.rel (%p871_p3) target bundleno = 299 (0x12b), region = 28  ;;  %s889_s29 = sand.u32 (!%p871_p3), 1, %s727_s13  }
  0x36   : > { %s473_s5 = sshll.u32 (!%p871_p3), %s889_s29, 2  ;;  %s202_s6 = scalar_lea.sflag (!%p871_p3), [#allocation3], %s889_s29 }
  0x37   : > { %s205_s18 = scalar_lea.vmem (!%p871_p3), [#allocation2], %s473_s5 }
  0x3a   : > { %706 = dma.done.wait (%p825_p8), %s202_s6, 64  }
  0x3b   : > { %708 = vsyncadd (%p825_p8), %s202_s6, 4294967232  ;;  %s474_s10 = sshll.u32 %s889_s29, 3  ;;  %s211_s23 = scalar_lea.sflag [#allocation6], %s889_s29 }
  0x3c   : > { %s214_s8 = scalar_lea.vmem [#allocation5], %s474_s10 }
  0x3d   : > { %710 = dma.done.wait (%p825_p8), %s211_s23, 128  }
  0x3e   : > { %712 = vsyncadd (%p825_p8), %s211_s23, 4294967168  ;;  %p243_p13 = scmp.eq.s32.totalorder %s735_s15, 0  ;;  %s239_s19 = scalar_lea.vmem [#allocation7], %s474_s10 }
  0x3f   : > { %v749_v0 = vmov (%p243_p13), 0.0  }
  0x40   : > { %248 = sbr.rel (!%p243_p13) target bundleno = 69 (0x45), region = 40  ;;  %249 = vst [vmem:[#allocation8] sm:$0xff] (%p243_p13), %v749_v0 }
  0x45 PF: > { %v574_v1 = vld [vmem:[%s214_s8] sm:$0xff]   ;;  %v750_v2 = vmov 0.0   ;;  %vm751_vm0 = vmmov 0   ;;  %v250_v3 = vld [vmem:[%s205_s18] sm:$0xf]  ;;  %vm259_vm1 = vcmask 130048  }
  0x46   : > { %489 = vmatprep.subr.bf16.mxu0 %v750_v2  ;;  %491 = vmatprep.mubr.msk.bf16.mxu0 %vm751_vm0, %v750_v2  ;;  %s480_s25 = sshll.u32 %s735_s15, 7  ;;  %s338_s21 = sshll.u32 %s239_s19, 4  ;;  %s910_s21 = int_to_ptr.vmem [resolvable:$true] %s338_s21 }
  0x47   : > { %490 = vmatpush3.bf16.msra.mxu0 %v574_v1  ;;  %s908_s9 = scalar_lea.hbm %s968_s2, %s480_s25  ;;  %s324_s11 = scalar_lea.sflag [#allocation4], %s889_s29 }
  0x48   : > { %s631_s4 = scalar_lea.vmem %s910_s21, 128  ;;  %s752_s15 = smov [#allocation7]  }
  0x49   : > { %p632_p8 = scmp.ne.s32.totalorder %s910_s21, %s631_s4  ;;  %s635_s30 = sshll.u32 %s752_s15, 4  ;;  %s636_s30 = int_to_ptr.vmem [resolvable:$false] %s635_s30 }
  0x4a   : > { %492 = vmatmul.mubr.msk.bf16.vlgmr.msra.gmra.mxu0 %vm259_vm1, %v250_v3  ;;  %s637_s5 = scalar_lea.vmem %s636_s30, 256  ;;  %p638_p3 = scmp.lt.s32.totalorder %s910_s21, %s636_s30 }
  0x4b   : > { %p633_p2 = pnand %p632_p8, %p831_p9  ;;  %p639_p11 = scmp.lt.s32.totalorder %s637_s5, %s631_s4 }
  0x4d   : > { %p634_p12 = pneg %p633_p2  ;;  %p640_p5 = por %p639_p11, %p638_p3 }
  0x4f   : > { %p641_p7 = pnand %p640_p5, %p634_p12 }
 0x10a   : > { %v297_v4 = vpop.f32.mrf.mxu0 }
 0x10b   : > { %v305_v5 = vrot.slane %v297_v4, 4  ;;  %v314_v6 = vmul.f32 %v297_v4, %v297_v4  ;;  %303 = vst [vmem:[%s239_s19] sm:$0xff] %v297_v4 }
 0x10c   : > { %v493_v7 = vpop.f32.mrf.mxu0 }
 0x10d   : > { %644 = shalt.err (!%p641_p7)
}
 0x10e   : > { %s645_s6 = scalar_lea.hbm %s908_s9, 128  ;;  %s649_s10 = scalar_lea.hbm %s968_s2, 2048 }
 0x10f   : > { %p646_p0 = scmp.ne.s32.totalorder %s908_s9, %s645_s6  ;;  %p650_p10 = scmp.lt.s32.totalorder %s908_s9, %s968_s2 }
 0x110   : > { %p651_p13 = scmp.lt.s32.totalorder %s649_s10, %s645_s6 }
 0x111   : > { %p647_p1 = pnand %p646_p0, %p831_p9 }
 0x112   : > { %p652_p8 = por %p651_p13, %p650_p10 }
 0x113   : > { %p648_p4 = pneg %p647_p1 }
 0x115   : > { %p653_p2 = pnand %p652_p8, %p648_p4 }
 0x117   : > { %656 = shalt.err (!%p653_p2)
}
 0x118   : > { %499 = dma.vmem_to_hbm [thread:$0]  (%p831_p9), %s910_s21, 128, %s908_s9, %s324_s11   ;;  %v306_v8 = vadd.f32 %v305_v5, %v297_v4  ;;  %v315_v9 = vrot.slane %v314_v6, 4  ;;  %v300_v10 = vpop.f32.mrf.mxu0  ;;  %v304_v18 = vld [vmem:[#allocation8] sm:$0x1]  ;;  %v313_v21 = vld [vmem:[#allocation8 + $0x1] sm:$0x1] }
 0x119   : > { %s753_s19 = smov [#allocation8]  }
 0x11a   : > { %v307_v11 = vrot.slane %v306_v8, 2  ;;  %v316_v12 = vadd.f32 %v315_v9, %v314_v6  ;;  %v494_v13 = vpop.f32.mrf.mxu0  ;;  %s349_s26 = sshll.u32 %s753_s19, 4  ;;  %s350_s26 = int_to_ptr.vmem [resolvable:$true] %s349_s26 }
 0x11b   : > { %s657_s25 = scalar_lea.vmem %s350_s26, 128  ;;  %p664_p11 = scmp.lt.s32.totalorder %s350_s26, %s350_s26 }
 0x11c   : > { %v308_v14 = vadd.f32 %v307_v11, %v306_v8  ;;  %v317_v15 = vrot.slane %v316_v12, 2  ;;  %p658_p9 = scmp.ne.s32.totalorder %s350_s26, %s657_s25  ;;  %p665_p5 = scmp.lt.s32.totalorder %s657_s25, %s657_s25 }
 0x11e   : > { %v309_v16 = vrot.slane %v308_v14, 1  ;;  %v318_v17 = vadd.f32 %v317_v15, %v316_v12  ;;  %p659_p12 = pnand %p658_p9, %p821_p6  ;;  %p666_p7 = por %p665_p5, %p664_p11 }
 0x120   : > { %v310_v19 = vadd.f32 %v309_v16, %v308_v14  ;;  %v319_v20 = vrot.slane %v318_v17, 1  ;;  %p660_p3 = pneg %p659_p12 }
 0x122   : > { %v311_v22 = vadd.f32 %v310_v19, %v304_v18  ;;  %v320_v23 = vadd.f32 %v319_v20, %v318_v17  ;;  %p667_p0 = pnand %p666_p7, %p660_p3 }
 0x124   : > { %312 = vst [vmem:[#allocation8] sm:$0x1] %v311_v22  ;;  %v321_v24 = vadd.f32 %v320_v23, %v313_v21 }
 0x126   : > { %322 = vst [vmem:[#allocation8 + $0x1] sm:$0x1] %v321_v24 }
 0x127   : > { %670 = shalt.err (!%p667_p0)
}
 0x128   : > { %501 = dma.vmem_to_hbm [thread:$0]  (%p821_p6), %s350_s26, 128, %s969_s3, [#allocation9]  }
 0x129   : > { %714 = dma.done.wait (%p821_p6), [#allocation9], 128  }
 0x12a   : > { %716 = vsyncadd (%p821_p6), [#allocation9], 4294967168 }
 0x12b PF: > { %p519_p1 = scmp.ge.s32.totalorder %s743_s17, 2  ;;  %s365_s7 = sand.u32 1, %s723_s12  }
 0x12c   : > { %p977_p4 = scmp.ne.s32.totalorder %s974_s28, 0  ;;  %s366_s9 = scalar_lea.sflag [#allocation4], %s365_s7 }
 0x12e   : > { %p513_p10 = pnand %p519_p1, %p977_p4 }
 0x130   : > { %p514_p13 = pneg %p513_p10 }
 0x132   : > { %718 = dma.done.wait (%p514_p13), %s366_s9, 128  }
 0x133   : > { %720 = vsyncadd (%p514_p13), %s366_s9, 4294967168  ;;  %s24_s17 = sadd.s32 1, %s743_s17   ;;  %s978_s12 = smov %s727_s13 }
 0x134   : > { %p21_p8 = scmp.ge.s32.totalorder %s24_s17, 18   ;;  %s979_s13 = smov %s731_s14 }
 0x135   : > { %s980_s14 = smov %s836_s27  ;;  %s981_s15 = smov %s739_s16 }
 0x136   : > { %s982_s16 = smov %s984_s20  ;;  %23 = sbr.rel (!%p21_p8) target bundleno = 9 (0x9), region = 98 }
 0x13b   :  { %371 = vsyncpa [#allocation3], 1 }
 0x13c   :  { %373 = vsyncpa [#allocation3 + $0x1], 1 }
 0x13d   :  { %374 = vsyncpa [#allocation6], 1 }
 0x13e   :  { %376 = vsyncpa [#allocation6 + $0x1], 1 }
 0x13f   :  { %377 = vsyncpa [#allocation4], 1 }
 0x140   :  { %379 = vsyncpa [#allocation4 + $0x1], 1 }
 0x141   :  { %380 = vsyncpa [#allocation9], 1 }

</bundles_post_ra>
